<compile_context>
chip_gen: v6e
topology: v6e:2x2x1
jax: 0.10.0
libtpu: 0.0.40
codegen_flags: <defaults>
</compile_context>

<pallas_src>
import jax
import jax.numpy as jnp
from jax.experimental import pallas as pl
from jax.experimental.pallas import tpu as pltpu


# ----------------------------- Pallas kernel --------------------------------
def _ib_loss_kernel(mu1_ref, std1_ref, eps1_ref, mu2_ref, std2_ref, eps2_ref,
                    w1a_ref, w1b_ref, b1_ref, w2_ref, b2_ref, w3_ref, b3_ref,
                    loss_ref):
    # mu/std/eps : [B, Z]       (VMEM)
    # w1a, w1b   : [Z, E]       (layer-1 weight split into z1 / z2 halves)
    # b1, b2, w3 : [1, E]
    # w2         : [E, E]
    # b3         : [1, 1]       (SMEM scalar)
    # loss_ref   : [1, 1]       (SMEM scalar output)
    B = mu1_ref.shape[0]

    # reparameterized samples (fused glue)
    z1 = mu1_ref[...] + std1_ref[...] * eps1_ref[...]          # [B, Z]
    z2 = mu2_ref[...] + std2_ref[...] * eps2_ref[...]          # [B, Z]

    # Layer 1: z2 contribution (+ bias) is identical for pos and neg -> once.
    c2 = jnp.dot(z2, w1b_ref[...],
                 preferred_element_type=jnp.float32) + b1_ref[...]   # [B, E]
    c1 = jnp.dot(z1, w1a_ref[...],
                 preferred_element_type=jnp.float32)                 # [B, E]

    # torch.roll(z1, 1, 0) applied after the linear projection (exact, since a
    # row permutation commutes with a per-row linear map).  [B, E] is a full
    # (8, 128) tile -> cheap XLU sublane rotate.
    c1_roll = pltpu.roll(c1, 1, axis=0)                              # [B, E]

    # Stack pos and neg along batch -> single pass through the rest of the MLP.
    h1 = jnp.maximum(jnp.concatenate([c1 + c2, c1_roll + c2], axis=0), 0.0)  # [2B, E]
    h2 = jnp.maximum(
        jnp.dot(h1, w2_ref[...], preferred_element_type=jnp.float32)
        + b2_ref[...], 0.0)                                                  # [2B, E]

    # Final Linear(E, 1) as an XLU lane reduction (no N=1 MXU matmul).
    out = jnp.sum(h2 * w3_ref[...], axis=-1, keepdims=True) + b3_ref[0, 0]   # [2B, 1]

    # loss = -mi_gradient
    #      = mean(softplus(-pos)) + mean(softplus(neg))
    #      = 2 * mean(softplus(v)),  v = [-pos ; neg]
    row = jax.lax.broadcasted_iota(jnp.int32, out.shape, 0)
    v = jnp.where(row < B, -out, out)
    loss_ref[0, 0] = 2.0 * jnp.mean(jnp.logaddexp(v, 0.0))   # stable softplus


# ------------------------------ JAX wrapper ----------------------------------
def _ib_loss_impl(mu1, std1, mu2, std2, params, eps1, eps2):
    """ibLoss.forward for two diagonal Normals (rsample noise passed as eps*)."""
    vmem = pl.BlockSpec(memory_space=pltpu.MemorySpace.VMEM)
    smem = pl.BlockSpec(memory_space=pltpu.MemorySpace.SMEM)

    loss = pl.pallas_call(
        _ib_loss_kernel,
        out_shape=jax.ShapeDtypeStruct((1, 1), jnp.float32),
        in_specs=[vmem, vmem, vmem,      # mu1, std1, eps1
                  vmem, vmem, vmem,      # mu2, std2, eps2
                  vmem, vmem, vmem,      # w1a, w1b, b1
                  vmem, vmem,            # w2, b2
                  vmem, smem],           # w3 (row), b3 (scalar)
        out_specs=smem,
    )(mu1, std1, eps1, mu2, std2, eps2,
      params["w1a"], params["w1b"], params["b1"],
      params["w2"], params["b2"],
      params["w3"], params["b3"])
    return loss[0, 0]


ib_loss_pallas = jax.jit(_ib_loss_impl)


def init_params(key, z_dim, embed_size):
    """Deterministic PyTorch-style (uniform +/- 1/sqrt(fan_in)) Linear init.

    Layer-1 weight is stored pre-split into the z1 / z2 halves (w1a, w1b),
    already transposed to [in_features, out_features].
    """
    k1, k2, k3, k4, k5, k6 = jax.random.split(key, 6)
    fan1 = 2 * z_dim
    fan2 = embed_size
    fan3 = embed_size
    u = lambda k, shape, fan: jax.random.uniform(
        k, shape, jnp.float32, -1.0 / jnp.sqrt(fan), 1.0 / jnp.sqrt(fan))
    w1 = u(k1, (2 * z_dim, embed_size), fan1)
    return {
        "w1a": w1[:z_dim],                       # [Z, E]  (z1 half)
        "w1b": w1[z_dim:],                       # [Z, E]  (z2 half)
        "b1": u(k2, (1, embed_size), fan1),
        "w2": u(k3, (embed_size, embed_size), fan2),
        "b2": u(k4, (1, embed_size), fan2),
        # final Linear(E, 1) stored as a row vector [1, E]
        "w3": u(k5, (1, embed_size), fan3),
        "b3": u(k6, (1, 1), fan3),
    }


if __name__ == "__main__":
    B = 8
    Z_DIM = 32
    EMBED_SIZE = 128

    key = jax.random.PRNGKey(0)
    kp, km1, ks1, km2, ks2, ke1, ke2 = jax.random.split(key, 7)

    params = init_params(kp, Z_DIM, EMBED_SIZE)

    mu1 = jax.random.normal(km1, (B, Z_DIM), jnp.float32)
    std1 = jax.nn.softplus(jax.random.normal(ks1, (B, Z_DIM), jnp.float32)) + 1e-3
    mu2 = jax.random.normal(km2, (B, Z_DIM), jnp.float32)
    std2 = jax.nn.softplus(jax.random.normal(ks2, (B, Z_DIM), jnp.float32)) + 1e-3
    # TODO(synk): torch.distributions.Normal.rsample's RNG stays in host JAX;
    # the standard-normal noise is passed in as eps1/eps2.
    eps1 = jax.random.normal(ke1, (B, Z_DIM), jnp.float32)
    eps2 = jax.random.normal(ke2, (B, Z_DIM), jnp.float32)

    loss = ib_loss_pallas(mu1, std1, mu2, std2, params, eps1, eps2)
    jax.block_until_ready(loss)

    # Pure-JAX reference check of the full forward (matches the PyTorch spec).
    z1 = mu1 + std1 * eps1
    z2 = mu2 + std2 * eps2
    w1_full = jnp.concatenate([params["w1a"], params["w1b"]], axis=0)
    xp = jnp.concatenate([z1, z2], 1)
    xn = jnp.concatenate([jnp.roll(z1, 1, 0), z2], 1)

    def mlp_ref(x):
        h = jnp.maximum(x @ w1_full + params["b1"], 0.0)
        h = jnp.maximum(h @ params["w2"] + params["b2"], 0.0)
        return jnp.sum(h * params["w3"], -1, keepdims=True) + params["b3"][0, 0]

    pos, neg = mlp_ref(xp), mlp_ref(xn)
    mi_grad = -jnp.mean(jax.nn.softplus(-pos)) - jnp.mean(jax.nn.softplus(neg))
    ref_loss = -mi_grad
    assert jnp.allclose(loss, ref_loss, atol=1e-5, rtol=1e-4), (loss, ref_loss)

    print("KERNEL_OK")
</pallas_src>

<mosaic_0001>
module attributes {stable_mosaic.version = 11 : i64} {
  func.func @_ib_loss_kernel(%arg0: memref<8x32xf32, #tpu.memory_space<vmem>>, %arg1: memref<8x32xf32, #tpu.memory_space<vmem>>, %arg2: memref<8x32xf32, #tpu.memory_space<vmem>>, %arg3: memref<8x32xf32, #tpu.memory_space<vmem>>, %arg4: memref<8x32xf32, #tpu.memory_space<vmem>>, %arg5: memref<8x32xf32, #tpu.memory_space<vmem>>, %arg6: memref<32x128xf32, #tpu.memory_space<vmem>>, %arg7: memref<32x128xf32, #tpu.memory_space<vmem>>, %arg8: memref<1x128xf32, #tpu.memory_space<vmem>>, %arg9: memref<128x128xf32, #tpu.memory_space<vmem>>, %arg10: memref<1x128xf32, #tpu.memory_space<vmem>>, %arg11: memref<1x128xf32, #tpu.memory_space<vmem>>, %arg12: memref<1x1xf32, #tpu.memory_space<smem>>, %arg13: memref<1x1xf32, #tpu.memory_space<smem>>) attributes {dimension_semantics = [], scalar_prefetch = 0 : i64, scratch_operands = 0 : i64, tpu.core_type = #tpu.core_type<tc>} {
    %c0 = arith.constant 0 : index
    %c0_0 = arith.constant 0 : index
    %0 = vector.load %arg0[%c0, %c0_0] : memref<8x32xf32, #tpu.memory_space<vmem>>, vector<8x32xf32>
    %c0_1 = arith.constant 0 : index
    %c0_2 = arith.constant 0 : index
    %1 = vector.load %arg1[%c0_1, %c0_2] : memref<8x32xf32, #tpu.memory_space<vmem>>, vector<8x32xf32>
    %c0_3 = arith.constant 0 : index
    %c0_4 = arith.constant 0 : index
    %2 = vector.load %arg2[%c0_3, %c0_4] : memref<8x32xf32, #tpu.memory_space<vmem>>, vector<8x32xf32>
    %3 = arith.mulf %1, %2 : vector<8x32xf32>
    %4 = arith.addf %0, %3 : vector<8x32xf32>
    %c0_5 = arith.constant 0 : index
    %c0_6 = arith.constant 0 : index
    %5 = vector.load %arg3[%c0_5, %c0_6] : memref<8x32xf32, #tpu.memory_space<vmem>>, vector<8x32xf32>
    %c0_7 = arith.constant 0 : index
    %c0_8 = arith.constant 0 : index
    %6 = vector.load %arg4[%c0_7, %c0_8] : memref<8x32xf32, #tpu.memory_space<vmem>>, vector<8x32xf32>
    %c0_9 = arith.constant 0 : index
    %c0_10 = arith.constant 0 : index
    %7 = vector.load %arg5[%c0_9, %c0_10] : memref<8x32xf32, #tpu.memory_space<vmem>>, vector<8x32xf32>
    %8 = arith.mulf %6, %7 : vector<8x32xf32>
    %9 = arith.addf %5, %8 : vector<8x32xf32>
    %c0_11 = arith.constant 0 : index
    %c0_12 = arith.constant 0 : index
    %10 = vector.load %arg7[%c0_11, %c0_12] : memref<32x128xf32, #tpu.memory_space<vmem>>, vector<32x128xf32>
    %cst = arith.constant dense<0.000000e+00> : vector<8x128xf32>
    %11 = tpu.matmul %9, %10, %cst {dimension_numbers = #tpu.dot_dimension_numbers<[1], [0], [0], [1], [0, 0, 1, 1], [], []>} : vector<8x32xf32>, vector<32x128xf32>, vector<8x128xf32> -> vector<8x128xf32>
    %c0_13 = arith.constant 0 : index
    %c0_14 = arith.constant 0 : index
    %12 = vector.load %arg8[%c0_13, %c0_14] : memref<1x128xf32, #tpu.memory_space<vmem>>, vector<1x128xf32>
    %13 = vector.broadcast %12 : vector<1x128xf32> to vector<8x128xf32>
    %14 = arith.addf %11, %13 : vector<8x128xf32>
    %c0_15 = arith.constant 0 : index
    %c0_16 = arith.constant 0 : index
    %15 = vector.load %arg6[%c0_15, %c0_16] : memref<32x128xf32, #tpu.memory_space<vmem>>, vector<32x128xf32>
    %cst_17 = arith.constant dense<0.000000e+00> : vector<8x128xf32>
    %16 = tpu.matmul %4, %15, %cst_17 {dimension_numbers = #tpu.dot_dimension_numbers<[1], [0], [0], [1], [0, 0, 1, 1], [], []>} : vector<8x32xf32>, vector<32x128xf32>, vector<8x128xf32> -> vector<8x128xf32>
    %c1_i32 = arith.constant 1 : i32
    %17 = tpu.dynamic_rotate %16 by %c1_i32 dim 0 : vector<8x128xf32>, i32 -> vector<8x128xf32>
    %18 = arith.addf %16, %14 : vector<8x128xf32>
    %19 = arith.addf %17, %14 : vector<8x128xf32>
    %20 = tpu.concatenate %18, %19 in 0 : vector<8x128xf32>, vector<8x128xf32> -> vector<16x128xf32>
    %cst_18 = arith.constant 0.000000e+00 : f32
    %21 = vector.broadcast %cst_18 : f32 to vector<16x128xf32>
    %22 = arith.maximumf %20, %21 : vector<16x128xf32>
    %c0_19 = arith.constant 0 : index
    %c0_20 = arith.constant 0 : index
    %23 = vector.load %arg9[%c0_19, %c0_20] : memref<128x128xf32, #tpu.memory_space<vmem>>, vector<128x128xf32>
    %cst_21 = arith.constant dense<0.000000e+00> : vector<16x128xf32>
    %24 = tpu.matmul %22, %23, %cst_21 {dimension_numbers = #tpu.dot_dimension_numbers<[1], [0], [0], [1], [0, 0, 1, 1], [], []>} : vector<16x128xf32>, vector<128x128xf32>, vector<16x128xf32> -> vector<16x128xf32>
    %c0_22 = arith.constant 0 : index
    %c0_23 = arith.constant 0 : index
    %25 = vector.load %arg10[%c0_22, %c0_23] : memref<1x128xf32, #tpu.memory_space<vmem>>, vector<1x128xf32>
    %26 = vector.broadcast %25 : vector<1x128xf32> to vector<16x128xf32>
    %27 = arith.addf %24, %26 : vector<16x128xf32>
    %cst_24 = arith.constant 0.000000e+00 : f32
    %28 = vector.broadcast %cst_24 : f32 to vector<16x128xf32>
    %29 = arith.maximumf %27, %28 : vector<16x128xf32>
    %c0_25 = arith.constant 0 : index
    %c0_26 = arith.constant 0 : index
    %30 = vector.load %arg11[%c0_25, %c0_26] : memref<1x128xf32, #tpu.memory_space<vmem>>, vector<1x128xf32>
    %31 = vector.broadcast %30 : vector<1x128xf32> to vector<16x128xf32>
    %32 = arith.mulf %29, %31 : vector<16x128xf32>
    %cst_27 = arith.constant dense<0.000000e+00> : vector<16xf32>
    %33 = vector.multi_reduction <add>, %32, %cst_27 [1] : vector<16x128xf32> to vector<16xf32>
    %34 = vector.shape_cast %33 : vector<16xf32> to vector<16x1xf32>
    %c0_28 = arith.constant 0 : index
    %c0_29 = arith.constant 0 : index
    %35 = memref.load %arg12[%c0_28, %c0_29] : memref<1x1xf32, #tpu.memory_space<smem>>
    %36 = vector.broadcast %35 : f32 to vector<16x1xf32>
    %37 = arith.addf %34, %36 : vector<16x1xf32>
    %38 = tpu.iota {dimensions = array<i32: 0>} : vector<16x1xi32>
    %c8_i32 = arith.constant 8 : i32
    %39 = vector.broadcast %c8_i32 : i32 to vector<16x1xi32>
    %40 = arith.cmpi slt, %38, %39 : vector<16x1xi32>
    %cst_30 = arith.constant 0.000000e+00 : f32
    %41 = vector.broadcast %cst_30 : f32 to vector<16x1xf32>
    %42 = arith.subf %41, %37 : vector<16x1xf32>
    %43 = arith.select %40, %42, %37 : vector<16x1xi1>, vector<16x1xf32>
    %cst_31 = arith.constant 0.000000e+00 : f32
    %44 = vector.broadcast %cst_31 : f32 to vector<16x1xf32>
    %45 = arith.maximumf %43, %44 : vector<16x1xf32>
    %46 = vector.broadcast %cst_31 : f32 to vector<16x1xf32>
    %47 = arith.subf %43, %46 : vector<16x1xf32>
    %48 = arith.cmpf one, %47, %47 : vector<16x1xf32>
    %49 = vector.broadcast %cst_31 : f32 to vector<16x1xf32>
    %50 = arith.addf %43, %49 : vector<16x1xf32>
    %51 = math.absf %47 : vector<16x1xf32>
    %cst_32 = arith.constant 0.000000e+00 : f32
    %52 = vector.broadcast %cst_32 : f32 to vector<16x1xf32>
    %53 = arith.subf %52, %51 : vector<16x1xf32>
    %54 = math.exp %53 : vector<16x1xf32>
    %55 = math.log1p %54 : vector<16x1xf32>
    %56 = arith.addf %45, %55 : vector<16x1xf32>
    %57 = arith.select %48, %50, %56 : vector<16x1xi1>, vector<16x1xf32>
    %58 = vector.shape_cast %57 : vector<16x1xf32> to vector<1x16x1xf32>
    %cst_33 = arith.constant dense<0.000000e+00> : vector<1xf32>
    %59 = vector.multi_reduction <add>, %58, %cst_33 [1, 2] : vector<1x16x1xf32> to vector<1xf32>
    %60 = vector.shape_cast %59 : vector<1xf32> to vector<1x1x1xf32>
    %61 = vector.extract %60[0, 0, 0] : f32 from vector<1x1x1xf32>
    %cst_34 = arith.constant 1.600000e+01 : f32
    %62 = arith.divf %61, %cst_34 : f32
    %cst_35 = arith.constant 2.000000e+00 : f32
    %63 = arith.mulf %cst_35, %62 : f32
    %c0_36 = arith.constant 0 : index
    %c0_37 = arith.constant 0 : index
    %64 = memref.load %arg13[%c0_36, %c0_37] : memref<1x1xf32, #tpu.memory_space<smem>>
    memref.store %63, %arg13[%c0_36, %c0_37] : memref<1x1xf32, #tpu.memory_space<smem>>
    return
  }
}

</mosaic_0001>

<bundles_post_ra>
// kernel: _ib_loss_impl.1
= control target key start
LH: loop header
LB: loop body
LE: loop exit
PB: predicated region body
PF: predicated region fallthrough
CT: control target
= control target key end

     0   :  { %19 = vsyncpa [#allocation4], 0  ;;  %s985_s0 = inlined_call_operand.hbm [shape: f32[8,32], index: 0, kind: input, shape index: {}]   ;;  %s986_s1 = inlined_call_operand.hbm [shape: f32[8,32], index: 1, kind: input, shape index: {}]   ;;  %s987_s2 = inlined_call_operand.vmem [shape: f32[8,32], index: 2, kind: input, shape index: {}]   ;;  %s988_s3 = inlined_call_operand.hbm [shape: f32[8,32], index: 3, kind: input, shape index: {}]   ;;  %s989_s4 = inlined_call_operand.hbm [shape: f32[8,32], index: 4, kind: input, shape index: {}]   ;;  %s990_s5 = inlined_call_operand.vmem [shape: f32[8,32], index: 5, kind: input, shape index: {}]   ;;  %s991_s6 = inlined_call_operand.hbm [shape: f32[32,128], index: 6, kind: input, shape index: {}]   ;;  %s992_s7 = inlined_call_operand.hbm [shape: f32[32,128], index: 7, kind: input, shape index: {}]   ;;  %s993_s8 = inlined_call_operand.hbm [shape: f32[1,128], index: 8, kind: input, shape index: {}]   ;;  %s994_s9 = inlined_call_operand.hbm [shape: f32[128,128], index: 9, kind: input, shape index: {}]   ;;  %s995_s10 = inlined_call_operand.hbm [shape: f32[1,128], index: 10, kind: input, shape index: {}]   ;;  %s996_s11 = inlined_call_operand.vmem [shape: f32[1,128], index: 11, kind: input, shape index: {}]   ;;  %s997_s12 = inlined_call_operand.<no memory space> [shape: f32[1,1], index: 12, kind: input, shape index: {}]   ;;  %s998_s13 = inlined_call_operand.hbm [shape: f32[1,1], index: 13, kind: output, shape index: {}]  }
   0x1   :  { %20 = vsyncpa [#allocation7], 0 }
   0x2   :  { %21 = vsyncpa [#allocation10], 0 }
   0x3   :  { %22 = vsyncpa [#allocation13], 0 }
   0x4   :  { %23 = vsyncpa [#allocation16], 0 }
   0x5   :  { %24 = vsyncpa [#allocation5], 0  ;;  %s846_s25 = smov [#allocation6]   ;;  %s847_s27 = smov [#allocation9]  }
   0x6   :  { %s41_s26 = sshll.u32 %s846_s25, 4  ;;  %s63_s28 = sshll.u32 %s847_s27, 4  ;;  %s42_s26 = int_to_ptr.vmem [resolvable:$true] %s41_s26  ;;  %s64_s28 = int_to_ptr.vmem [resolvable:$true] %s63_s28 }
   0x7   :  { %s654_s29 = scalar_lea.vmem %s42_s26, 128  ;;  %p659_p1 = scmp.lt.s32.totalorder %s42_s26, %s42_s26 }
   0x8   :  { %p655_p0 = scmp.ne.s32.totalorder %s42_s26, %s654_s29  ;;  %p660_p2 = scmp.lt.s32.totalorder %s654_s29, %s654_s29 }
   0xa   :  { %p661_p3 = por %p660_p2, %p659_p1 }
   0xc   :  { %p662_p4 = pnand %p661_p3, %p655_p0 }
   0xe   :  { %665 = shalt.err (!%p662_p4)
}
   0xf   :  { %44 = dma.hbm_to_vmem [thread:$0]  %s986_s1, 128, %s42_s26, [#allocation7]  }
  0x10   :  { %s674_s15 = scalar_lea.vmem %s64_s28, 128  ;;  %p679_p6 = scmp.lt.s32.totalorder %s64_s28, %s64_s28 }
  0x11   :  { %p675_p5 = scmp.ne.s32.totalorder %s64_s28, %s674_s15  ;;  %p680_p7 = scmp.lt.s32.totalorder %s674_s15, %s674_s15 }
  0x13   :  { %p681_p8 = por %p680_p7, %p679_p6 }
  0x15   :  { %p682_p9 = pnand %p681_p8, %p675_p5 }
  0x17   :  { %685 = shalt.err (!%p682_p9)
}
  0x18   :  { %66 = dma.hbm_to_vmem [thread:$0]  %s989_s4, 128, %s64_s28, [#allocation10]  }
  0x19   :  { %s848_s18 = smov [#allocation12]   ;;  %s849_s20 = smov [#allocation15]  }
  0x1a   :  { %s86_s19 = sshll.u32 %s848_s18, 4  ;;  %s108_s21 = sshll.u32 %s849_s20, 4  ;;  %s87_s19 = int_to_ptr.vmem [resolvable:$true] %s86_s19  ;;  %s109_s21 = int_to_ptr.vmem [resolvable:$true] %s108_s21 }
  0x1b   :  { %s694_s22 = scalar_lea.vmem %s87_s19, 512  ;;  %p699_p11 = scmp.lt.s32.totalorder %s87_s19, %s87_s19 }
  0x1c   :  { %p695_p10 = scmp.ne.s32.totalorder %s87_s19, %s694_s22  ;;  %p700_p12 = scmp.lt.s32.totalorder %s694_s22, %s694_s22 }
  0x1e   :  { %p701_p13 = por %p700_p12, %p699_p11 }
  0x20   :  { %p702_p0 = pnand %p701_p13, %p695_p10 }
  0x22   :  { %705 = shalt.err (!%p702_p0)
}
  0x23   :  { %s850_s1 = smov 128   ;;  %s851_s23 = smov 8  }
  0x24   :  { %92 = dma.hbm_to_vmem [thread:$0]  %s992_s7, 512, %s87_s19, [#allocation13], %s850_s1, %s850_s1, %s851_s23  }
  0x25   :  { %s714_s25 = scalar_lea.vmem %s109_s21, 2048  ;;  %p719_p2 = scmp.lt.s32.totalorder %s109_s21, %s109_s21 }
  0x26   :  { %p715_p1 = scmp.ne.s32.totalorder %s109_s21, %s714_s25  ;;  %p720_p3 = scmp.lt.s32.totalorder %s714_s25, %s714_s25 }
  0x28   :  { %p721_p4 = por %p720_p3, %p719_p2 }
  0x2a   :  { %p722_p5 = pnand %p721_p4, %p715_p1 }
  0x2c   :  { %725 = shalt.err (!%p722_p5)
}
  0x2d   :  { %114 = dma.hbm_to_vmem [thread:$0]  %s994_s9, 2048, %s109_s21, [#allocation16], %s850_s1, %s850_s1, %s851_s23  }
  0x2e   :  { %s852_s28 = smov [#allocation3]   ;;  %s853_s30 = smov [#allocation8]  }
  0x2f   :  { %s31_s29 = sshll.u32 %s852_s28, 4  ;;  %s53_s14 = sshll.u32 %s853_s30, 4  ;;  %s32_s29 = int_to_ptr.vmem [resolvable:$true] %s31_s29  ;;  %s54_s14 = int_to_ptr.vmem [resolvable:$true] %s53_s14 }
  0x30   :  { %s734_s7 = scalar_lea.vmem %s32_s29, 128  ;;  %p739_p7 = scmp.lt.s32.totalorder %s32_s29, %s32_s29 }
  0x31   :  { %p735_p6 = scmp.ne.s32.totalorder %s32_s29, %s734_s7  ;;  %p740_p8 = scmp.lt.s32.totalorder %s734_s7, %s734_s7 }
  0x33   :  { %p741_p9 = por %p740_p8, %p739_p7 }
  0x35   :  { %p742_p10 = pnand %p741_p9, %p735_p6 }
  0x37   :  { %745 = shalt.err (!%p742_p10)
}
  0x38   :  { %34 = dma.hbm_to_vmem [thread:$0]  %s985_s0, 128, %s32_s29, [#allocation4]  }
  0x39   :  { %s754_s17 = scalar_lea.vmem %s54_s14, 128  ;;  %p759_p12 = scmp.lt.s32.totalorder %s54_s14, %s54_s14 }
  0x3a   :  { %p755_p11 = scmp.ne.s32.totalorder %s54_s14, %s754_s17  ;;  %p760_p13 = scmp.lt.s32.totalorder %s754_s17, %s754_s17 }
  0x3c   :  { %p761_p0 = por %p760_p13, %p759_p12 }
  0x3e   :  { %p762_p1 = pnand %p761_p0, %p755_p11 }
  0x40   :  { %765 = shalt.err (!%p762_p1)
}
  0x41   :  { %56 = dma.hbm_to_vmem [thread:$0]  %s988_s3, 128, %s54_s14, [#allocation7]  }
  0x42   :  { %s854_s19 = smov [#allocation11]   ;;  %s855_s21 = smov [#allocation14]  }
  0x43   :  { %s74_s20 = sshll.u32 %s854_s19, 4  ;;  %s99_s22 = sshll.u32 %s855_s21, 4  ;;  %s75_s20 = int_to_ptr.vmem [resolvable:$true] %s74_s20  ;;  %s100_s22 = int_to_ptr.vmem [resolvable:$true] %s99_s22 }
  0x44   :  { %s774_s24 = scalar_lea.vmem %s75_s20, 512  ;;  %p779_p3 = scmp.lt.s32.totalorder %s75_s20, %s75_s20 }
  0x45   :  { %p775_p2 = scmp.ne.s32.totalorder %s75_s20, %s774_s24  ;;  %p780_p4 = scmp.lt.s32.totalorder %s774_s24, %s774_s24 }
  0x47   :  { %p781_p5 = por %p780_p4, %p779_p3 }
  0x49   :  { %p782_p6 = pnand %p781_p5, %p775_p2 }
  0x4b   :  { %785 = shalt.err (!%p782_p6)
}
  0x4c   :  { %80 = dma.hbm_to_vmem [thread:$0]  %s991_s6, 512, %s75_s20, [#allocation10], %s850_s1, %s850_s1, %s851_s23  }
  0x4d   :  { %s794_s3 = scalar_lea.vmem %s100_s22, 16  ;;  %s798_s25 = scalar_lea.vmem %s100_s22, 32 }
  0x4e   :  { %p795_p7 = scmp.ne.s32.totalorder %s100_s22, %s794_s3  ;;  %p799_p8 = scmp.lt.s32.totalorder %s100_s22, %s100_s22 }
  0x4f   :  { %p800_p9 = scmp.lt.s32.totalorder %s798_s25, %s794_s3 }
  0x51   :  { %p801_p10 = por %p800_p9, %p799_p8 }
  0x53   :  { %p802_p11 = pnand %p801_p10, %p795_p7 }
  0x55   :  { %805 = shalt.err (!%p802_p11)
}
  0x56   :  { %102 = dma.hbm_to_vmem [thread:$0]  %s993_s8, 16, %s100_s22, [#allocation13]  }
  0x57   :  { %s856_s28 = smov [#allocation17]  }
  0x58   :  { %s121_s29 = sshll.u32 %s856_s28, 4  ;;  %s122_s29 = int_to_ptr.vmem [resolvable:$true] %s121_s29 }
  0x59   :  { %s814_s30 = scalar_lea.vmem %s122_s29, 16  ;;  %s818_s14 = scalar_lea.vmem %s122_s29, 32 }
  0x5a   :  { %p815_p12 = scmp.ne.s32.totalorder %s122_s29, %s814_s30  ;;  %p819_p13 = scmp.lt.s32.totalorder %s122_s29, %s122_s29 }
  0x5b   :  { %p820_p0 = scmp.lt.s32.totalorder %s818_s14, %s814_s30 }
  0x5d   :  { %p821_p1 = por %p820_p0, %p819_p13 }
  0x5f   :  { %p822_p2 = pnand %p821_p1, %p815_p12 }
  0x61   :  { %825 = shalt.err (!%p822_p2)
}
  0x62   :  { %124 = dma.hbm_to_vmem [thread:$0]  %s995_s10, 16, %s122_s29, [#allocation16]  }
  0x63   :  { %834 = dma.done.wait [#allocation4], 128  }
  0x64   :  { %835 = vsyncadd [#allocation4], 4294967168 }
  0x65   :  { %836 = dma.done.wait [#allocation7], 256  }
  0x66   :  { %837 = vsyncadd [#allocation7], 4294967040 }
  0x67   :  { %838 = dma.done.wait [#allocation10], 640  }
  0x68   :  { %839 = vsyncadd [#allocation10], 4294966656 }
  0x69   :  { %840 = dma.done.wait [#allocation13], 528  }
  0x6a   :  { %841 = vsyncadd [#allocation13], 4294966768 }
  0x6b   :  { %842 = dma.done.wait [#allocation16], 2064  }
  0x6c   :  { %843 = vsyncadd [#allocation16], 4294965232  ;;  %v857_v0 = vmov 0.0   ;;  %vm858_vm0 = vmmov 0   ;;  %v169_v1 = vld [vmem:[#allocation12 + $0x18] sm:$0xff]  ;;  %v168_v2 = vld [vmem:[#allocation12 + $0x10] sm:$0xff]  ;;  %v447_v56 = vstv %s997_s12 }
  0x6d   :  { %565 = vmatprep.subr.mxu1 %v857_v0  ;;  %573 = vmatprep.mubr.msk.f32.mxu1 %vm858_vm0, %v857_v0  ;;  %v162_v3 = vld [vmem:[#allocation9] sm:$0xff]  ;;  %v167_v4 = vld [vmem:[#allocation12 + $0x8] sm:$0xff]  ;;  %v161_v5 = vld [vmem:[#allocation8] sm:$0xff]  ;;  %vm177_vm1 = vcmask 261120   ;;  %vm495_vm5 = vcmask 7168   ;;  %s859_s9 = smov [#allocation18]  }
  0x6e   :  { %566 = vmatpush3.msra.mxu1 %v169_v1  ;;  %v163_v6 = vld [vmem:[%s990_s5] sm:$0xff]  ;;  %v157_v11 = vld [vmem:[#allocation6] sm:$0xff]  ;;  %v347_v13 = vld [vmem:[#allocation15 + $0x70] sm:$0xff] }
  0x6f   :  { %567 = vmatprep.subr.mxu1 %v857_v0  ;;  %v164_v7 = vmul.f32 %v163_v6, %v162_v3  ;;  %v166_v8 = vld [vmem:[#allocation12] sm:$0xff]  ;;  %v254_v14 = vld [vmem:[#allocation11 + $0x18] sm:$0xff]  ;;  %v253_v15 = vld [vmem:[#allocation11 + $0x10] sm:$0xff] }
  0x70   :  { %568 = vmatpush3.msra.mxu1 %v168_v2  ;;  %v348_v9 = vld [vmem:[#allocation15 + $0x78] sm:$0xff]  ;;  %v346_v17 = vld [vmem:[#allocation15 + $0x68] sm:$0xff]  ;;  %v345_v20 = vld [vmem:[#allocation15 + $0x60] sm:$0xff] }
  0x71   :  { %569 = vmatprep.subr.mxu1 %v857_v0  ;;  %v165_v10 = vadd.f32 %v164_v7, %v161_v5  ;;  %v158_v12 = vld [vmem:[%s987_s2] sm:$0xff]  ;;  %587 = vmatprep.subr.mxu0 %v348_v9  ;;  %v252_v19 = vld [vmem:[#allocation11 + $0x8] sm:$0xff]  ;;  %v343_v24 = vld [vmem:[#allocation15 + $0x50] sm:$0xff] }
  0x72   :  { %570 = vmatpush3.msra.mxu1 %v167_v4  ;;  %588 = vmatpush3.msra.mxu0 %v348_v9  ;;  %v159_v16 = vmul.f32 %v158_v12, %v157_v11  ;;  %v156_v18 = vld [vmem:[#allocation3] sm:$0xff]  ;;  %v342_v25 = vld [vmem:[#allocation15 + $0x48] sm:$0xff]  ;;  %v339_v28 = vld [vmem:[#allocation15 + $0x30] sm:$0xff] }
  0x73   :  { %571 = vmatprep.subr.mxu1 %v857_v0  ;;  %589 = vmatprep.subr.mxu0 %v347_v13  ;;  %v251_v21 = vld [vmem:[#allocation11] sm:$0xff]  ;;  %v338_v29 = vld [vmem:[#allocation15 + $0x28] sm:$0xff]  ;;  %v335_v32 = vld [vmem:[#allocation15 + $0x10] sm:$0xff] }
  0x74   :  { %572 = vmatpush3.msra.mxu1 %v166_v8  ;;  %590 = vmatpush3.msra.mxu0 %v347_v13  ;;  %v160_v22 = vadd.f32 %v159_v16, %v156_v18  ;;  %v344_v23 = vld [vmem:[#allocation15 + $0x58] sm:$0xff]  ;;  %v341_v26 = vld [vmem:[#allocation15 + $0x40] sm:$0xff]  ;;  %v334_v33 = vld [vmem:[#allocation15 + $0x8] sm:$0xff] }
  0x75   :  { %574 = vmatmul.mubr.msk.f32.vlgmr.msra.gmra.mxu1 %vm177_vm1, %v165_v10  ;;  %576 = vmatprep.subr.mxu1 %v857_v0  ;;  %v340_v27 = vld [vmem:[#allocation15 + $0x38] sm:$0xff]  ;;  %v337_v30 = vld [vmem:[#allocation15 + $0x20] sm:$0xff] }
  0x76   :  { %577 = vmatpush3.msra.mxu1 %v254_v14  ;;  %584 = vmatprep.mubr.msk.f32.mxu1 %vm858_vm0, %v857_v0  ;;  %v336_v31 = vld [vmem:[#allocation15 + $0x18] sm:$0xff]  ;;  %v333_v34 = vld [vmem:[#allocation15] sm:$0xff] }
  0x77   :  { %578 = vmatprep.subr.mxu1 %v857_v0  ;;  %591 = vmatprep.subr.mxu0 %v346_v17  ;;  %v532_v37 = vld [vmem:[#allocation14] ss:$0 sm:$0xff]  ;;  %v535_v47 = vld [vmem:[#allocation17] ss:$0 sm:$0xff] }
  0x78   :  { %579 = vmatpush3.msra.mxu1 %v253_v15  ;;  %592 = vmatpush3.msra.mxu0 %v346_v17  ;;  %v536_v52 = vld [vmem:[%s996_s11] ss:$0 sm:$0xff] }
  0x79   :  { %580 = vmatprep.subr.mxu1 %v857_v0  ;;  %593 = vmatprep.subr.mxu0 %v345_v20 }
  0x7a   :  { %581 = vmatpush3.msra.mxu1 %v252_v19  ;;  %594 = vmatpush3.msra.mxu0 %v345_v20 }
  0x7b   :  { %582 = vmatprep.subr.mxu1 %v857_v0  ;;  %595 = vmatprep.subr.mxu0 %v344_v23 }
  0x7c   :  { %583 = vmatpush3.msra.mxu1 %v251_v21  ;;  %596 = vmatpush3.msra.mxu0 %v344_v23 }
  0x7d   :  { %585 = vmatmul.mubr.msk.f32.vlgmr.msra.gmra.mxu1 %vm177_vm1, %v160_v22  ;;  %597 = vmatprep.subr.mxu0 %v343_v24 }
  0x7e   :  { %598 = vmatpush3.msra.mxu0 %v343_v24 }
  0x7f   :  { %599 = vmatprep.subr.mxu0 %v342_v25 }
  0x80   :  { %600 = vmatpush3.msra.mxu0 %v342_v25 }
  0x81   :  { %601 = vmatprep.subr.mxu0 %v341_v26 }
  0x82   :  { %602 = vmatpush3.msra.mxu0 %v341_v26 }
  0x83   :  { %603 = vmatprep.subr.mxu0 %v340_v27 }
  0x84   :  { %604 = vmatpush3.msra.mxu0 %v340_v27 }
  0x85   :  { %605 = vmatprep.subr.mxu0 %v339_v28 }
  0x86   :  { %606 = vmatpush3.msra.mxu0 %v339_v28 }
  0x87   :  { %607 = vmatprep.subr.mxu0 %v338_v29 }
  0x88   :  { %608 = vmatpush3.msra.mxu0 %v338_v29 }
  0x89   :  { %609 = vmatprep.subr.mxu0 %v337_v30 }
  0x8a   :  { %610 = vmatpush3.msra.mxu0 %v337_v30 }
  0x8b   :  { %611 = vmatprep.subr.mxu0 %v336_v31 }
  0x8c   :  { %612 = vmatpush3.msra.mxu0 %v336_v31 }
  0x8d   :  { %613 = vmatprep.subr.mxu0 %v335_v32 }
  0x8e   :  { %614 = vmatpush3.msra.mxu0 %v335_v32 }
  0x8f   :  { %615 = vmatprep.subr.mxu0 %v334_v33 }
  0x90   :  { %616 = vmatpush3.msra.mxu0 %v334_v33 }
  0x91   :  { %617 = vmatprep.subr.mxu0 %v333_v34 }
  0x92   :  { %618 = vmatpush3.msra.mxu0 %v333_v34 }
 0x135   :  { %v247_v35 = vpop.f32.mrf.mxu1 }
 0x136   :  { %v248_v38 = vadd.f32 %v532_v37, %v247_v35 }
 0x137   :  { %v575_v36 = vpop.f32.mrf.mxu1 }
 0x13d   :  { %v324_v39 = vpop.f32.mrf.mxu1 }
 0x13e   :  { %v328_v40 = vrot.slane %v324_v39, 7  ;;  %v329_v41 = vadd.f32 %v324_v39, %v248_v38 }
 0x13f   :  { %v586_v42 = vpop.f32.mrf.mxu1 }
 0x140   :  { %v330_v43 = vadd.f32 %v328_v40, %v248_v38  ;;  %v331_v44 = vmax.f32 %v329_v41, 0.0 }
 0x142   :  { %619 = vmatprep.mubr.f32.mxu0 %v331_v44  ;;  %v332_v45 = vmax.f32 %v330_v43, 0.0 }
 0x144   :  { %620 = vmatmul.mubr.f32.vlgmr.msra.gmra.mxu0 %v332_v45 }
 0x204   :  { %v621_v46 = vpop.f32.mrf.mxu0 }
 0x205   :  { %v428_v49 = vadd.f32 %v621_v46, %v535_v47 }
 0x206   :  { %v422_v48 = vpop.f32.mrf.mxu0 }
 0x207   :  { %v423_v50 = vadd.f32 %v535_v47, %v422_v48  ;;  %v432_v53 = vmax.f32 %v428_v49, 0.0 }
 0x209   :  { %v431_v51 = vmax.f32 %v423_v50, 0.0  ;;  %v441_v55 = vmul.f32 %v536_v52, %v432_v53 }
 0x20b   :  { %v440_v54 = vmul.f32 %v536_v52, %v431_v51 }
 0x20d   :  { %442 = vadd.xlane.f32.xlu0 %v440_v54 }
 0x211   :  { %444 = vadd.xlane.f32.xlu0 %v441_v55 }
 0x296   :  { %v443_v57 = vpop.xlane.xlu0 %442 }
 0x297   :  { %v448_v58 = vadd.f32 %v447_v56, %v443_v57 }
 0x299   :  { %v455_v59 = vsub.f32 0.0, %v448_v58 }
 0x29a   :  { %v445_v60 = vpop.xlane.xlu0 %444 }
 0x29b   :  { %v465_v61 = vand.u32 2147483647, %v455_v59  ;;  %v449_v62 = vadd.f32 %v447_v56, %v445_v60  ;;  %v459_v18 = vmax.f32 %v455_v59, 0.0  ;;  %vm461_vm4 = vcmp.ne.f32.partialorder %v455_v59, %v455_v59 }
 0x29d   :  { %v467_v63 = vsub.f32 0.0, %v465_v61  ;;  %v466_v0 = vand.u32 2147483647, %v449_v62  ;;  %v460_v22 = vmax.f32 %v449_v62, 0.0  ;;  %vm462_vm6 = vcmp.ne.f32.partialorder %v449_v62, %v449_v62 }
 0x29f   :  { %v469_v1 = vmul.f32 1.442695, %v467_v63  ;;  %v468_v2 = vsub.f32 0.0, %v466_v0 }
 0x2a1   :  { %638 = vpow2.f32 %v469_v1  ;;  %v471_v3 = vmul.f32 1.442695, %v468_v2 }
 0x2a3   :  { %640 = vpow2.f32 %v471_v3 }
 0x2ae   :  { %v639_v4 = vpop.eup %638 }
 0x2af   :  { %v473_v5 = vadd.f32 1.0, %v639_v4  ;;  %v476_v8 = vmul.f32 -0.5, %v639_v4  ;;  %v479_v11 = vand.u32 2147483647, %v639_v4 }
 0x2b0   :  { %v641_v6 = vpop.eup %640 }
 0x2b1   :  { %642 = vlog2.f32 %v473_v5  ;;  %v482_v7 = vadd.f32 1.0, %v641_v6  ;;  %v485_v9 = vmul.f32 -0.5, %v641_v6  ;;  %v477_v10 = vadd.f32 1.0, %v476_v8 }
 0x2b2   :  { %v488_v14 = vand.u32 2147483647, %v641_v6  ;;  %vm480_vm2 = vcmp.lt.f32.partialorder %v479_v11, 0.0004427343 }
 0x2b3   :  { %644 = vlog2.f32 %v482_v7  ;;  %v486_v12 = vadd.f32 1.0, %v485_v9  ;;  %v478_v16 = vmul.f32 %v639_v4, %v477_v10 }
 0x2b4   :  { %vm489_vm3 = vcmp.lt.f32.partialorder %v488_v14, 0.0004427343 }
 0x2b5   :  { %v487_v21 = vmul.f32 %v641_v6, %v486_v12 }
 0x2be   :  { %v643_v13 = vpop.eup %642 }
 0x2bf   :  { %v475_v15 = vmul.f32 0.6931472, %v643_v13 }
 0x2c0   :  { %v645_v17 = vpop.eup %644 }
 0x2c1   :  { %v481_v19 = vsel %vm480_vm2, %v478_v16, %v475_v15  ;;  %v484_v20 = vmul.f32 0.6931472, %v645_v17 }
 0x2c2   :  { %v491_v23 = vadd.f32 %v481_v19, %v459_v18 }
 0x2c3   :  { %v490_v24 = vsel %vm489_vm3, %v487_v21, %v484_v20 }
 0x2c4   :  { %v492_v25 = vadd.f32 %v490_v24, %v460_v22  ;;  %v493_v26 = vsel %vm461_vm4, %v455_v59, %v491_v23 }
 0x2c5   :  { %v496_v28 = vsel %vm495_vm5, %v493_v26, 0.0 }
 0x2c6   :  { %v494_v27 = vsel %vm462_vm6, %v449_v62, %v492_v25 }
 0x2c7   :  { %v497_v29 = vsel %vm495_vm5, %v494_v27, 0.0 }
 0x2c8   :  { %v498_v30 = vadd.f32 %v497_v29, %v496_v28 }
 0x2ca   :  { %499 = vadd.xlane.f32.xlu1 %v498_v30 }
 0x353   :  { %v500_v31 = vpop.xlane.xlu1 %499 }
 0x354   :  { %v501_v32 = vrot.slane %v500_v31, 4 }
 0x356   :  { %v502_v33 = vadd.f32 %v501_v32, %v500_v31 }
 0x358   :  { %v503_v34 = vrot.slane %v502_v33, 2 }
 0x35a   :  { %v504_v35 = vadd.f32 %v503_v34, %v502_v33 }
 0x35c   :  { %v505_v36 = vrot.slane %v504_v35, 1 }
 0x35e   :  { %v506_v37 = vadd.f32 %v505_v36, %v504_v35 }
 0x360   :  { %622 = vpush %v506_v37 }
 0x391   :  { %s623_s11 = spop %622 }
 0x392   :  { %s510_s12 = smul.f32 0.0625, %s623_s11 }
 0x394   :  { %s511_s17 = smul.f32 2.0, %s510_s12 }
 0x396   :  { %513 = sst [smem:[#allocation18]] %s511_s17 }
 0x397   :  { %521 = dma.smem_to_hbm %s859_s9, 16, %s998_s13, [#allocation5]  }
 0x398   :  { %844 = dma.done.wait [#allocation5], 16  }
 0x399   :  { %845 = vsyncadd [#allocation5], 4294967280 }
 0x39a   :  { %525 = sfence }
 0x39b   :  { %526 = vsyncpa [#allocation4], 1 }
 0x39c   :  { %527 = vsyncpa [#allocation7], 1 }
 0x39d   :  { %528 = vsyncpa [#allocation10], 1 }
 0x39e   :  { %529 = vsyncpa [#allocation13], 1 }
 0x39f   :  { %530 = vsyncpa [#allocation16], 1 }
 0x3a0   :  { %531 = vsyncpa [#allocation5], 1 }

</bundles_post_ra>
